<compile_context>
chip_gen: v7x
topology: tpu7x:2x2x1
jax: 0.10.0
libtpu: 0.0.40
codegen_flags: <defaults>
</compile_context>

<pallas_src>
import functools
import math

import jax
import jax.numpy as jnp
import numpy as np
from jax.experimental import pallas as pl
from jax.experimental.pallas import tpu as pltpu

LOG_2PI = math.log(2.0 * math.pi)


def nf_prior_kernel(z_ref, p_ref, b_ref, out_ref, *, K):
    z = z_ref[...]                                    # (B, D) float32
    B, D = z.shape
    P = p_ref[...]                                    # (D, D + 2K), loaded once

    # Identity mask used for the single column -> row transpose per flow
    # (valid because B == z_dim; avoids a tiny unaligned transpose).
    ridx = jax.lax.broadcasted_iota(jnp.int32, (B, B), 0)
    cidx = jax.lax.broadcasted_iota(jnp.int32, (B, B), 1)
    eye = (ridx == cidx).astype(jnp.float32)

    # log p0 = -0.5 * sum(z**2 + log(2*pi), dim=1); the constant term is a
    # compile-time scalar hoisted out of the reduction.
    log_p0 = -0.5 * jnp.sum(z * z, axis=1, keepdims=True) - (0.5 * D * LOG_2PI)

    # scalar accumulator for sum of log|det J| over the K flows -> (1, 1)
    s = jnp.zeros((1, 1), jnp.float32)

    # `for flow in reversed(self.flows)` -> k = K-1 .. 0 (statically unrolled)
    for k in range(K - 1, -1, -1):
        w_row = P[k:k + 1, 0:D]                       # (1, D)  row layout
        u_col = P[:, D + k:D + k + 1]                 # (D, 1)  column layout
        uw_col = P[:, D + K + k:D + K + k + 1]        # (D, 1)  (u*w) columns
        b_k = b_ref[k]                                # scalar (SMEM)

        # z_k = flow(z_k):  linear = z @ w + b   (per-row lane reduce)
        lin = jnp.sum(z * w_row, axis=1, keepdims=True) + b_k          # (B, 1)
        # f_z[i, j] = z[i, j] + u[j] * tanh(linear[j])  (torch broadcast, B==D)
        add_row = jnp.sum((u_col * jnp.tanh(lin)) * eye,
                          axis=0, keepdims=True)                       # (1, D)
        z = z + add_row

        # log_abs_det_jacobian evaluated on the transformed z_k, done fully in
        # column layout -- no second transpose needed.
        lin2 = jnp.sum(z * w_row, axis=1, keepdims=True) + b_k         # (B, 1)
        t2 = jnp.tanh(lin2)
        det = 1.0 + jnp.sum(uw_col * (1.0 - t2 * t2), keepdims=True)   # (1, 1)
        s = s + jnp.log(jnp.abs(det) + 1e-8)

    # log_p = log_p0 - sum_log_abs_det_jacobians  (scalar broadcast over batch)
    out_ref[...] = log_p0 - s


def normalizing_flow_prior(z, u, w, b):
    """Pallas wrapper: z (B, z_dim), u/w (K, z_dim), b (K, 1) -> log_p (B,)."""
    B, D = z.shape
    K = u.shape[0]
    assert B == D, "module's broadcasting only works when batch == z_dim"
    assert K <= D, "parameter packing assumes K <= z_dim"

    # Pack all flow parameters into one VMEM block (see header for layout).
    u32 = u.astype(jnp.float32)
    w32 = w.astype(jnp.float32)
    P = jnp.zeros((D, D + 2 * K), jnp.float32)
    P = P.at[:K, :D].set(w32)
    P = P.at[:, D:D + K].set(u32.T)
    P = P.at[:, D + K:D + 2 * K].set((u32 * w32).T)
    b_flat = b.reshape(K).astype(jnp.float32)

    kernel = functools.partial(nf_prior_kernel, K=K)
    out = pl.pallas_call(
        kernel,
        out_shape=jax.ShapeDtypeStruct((B, 1), jnp.float32),
        grid=(1,),
        in_specs=[
            pl.BlockSpec((B, D), lambda i: (0, 0)),
            pl.BlockSpec((D, D + 2 * K), lambda i: (0, 0)),
            pl.BlockSpec(memory_space=pltpu.MemorySpace.SMEM),
        ],
        out_specs=pl.BlockSpec((B, 1), lambda i: (0, 0)),
        compiler_params=pltpu.CompilerParams(
            dimension_semantics=("arbitrary",)),
    )(z, P, b_flat)
    return out.reshape(B)


def reference(z, u, w, b):
    """Pure-JAX mirror of the PyTorch forward (same broadcasting)."""
    log_p0 = -0.5 * jnp.sum(z * z + LOG_2PI, axis=1)
    s = 0.0
    zk = z
    for k in range(u.shape[0] - 1, -1, -1):
        lin = zk @ w[k] + b[k, 0]                     # (B,)
        zk = zk + u[k] * jnp.tanh(lin)                # (D,)*(B,), then (B,D)+(B,)
        lin2 = zk @ w[k] + b[k, 0]
        psi = (1.0 - jnp.tanh(lin2) ** 2) * w[k]      # (B,)*(D,)
        det = 1.0 + jnp.dot(u[k], psi)
        s = s + jnp.log(jnp.abs(det) + 1e-8)
    return log_p0 - s


if __name__ == "__main__":
    key = jax.random.PRNGKey(0)
    z_dim = 32
    K = 4
    B = z_dim  # required by the module's broadcasting semantics

    k1, k2, k3, k4 = jax.random.split(key, 4)
    z = jax.random.normal(k1, (B, z_dim), dtype=jnp.float32)
    u = jax.random.normal(k2, (K, z_dim), dtype=jnp.float32)   # torch.randn(z_dim) per flow
    w = jax.random.normal(k3, (K, z_dim), dtype=jnp.float32)   # torch.randn(z_dim) per flow
    b = jax.random.normal(k4, (K, 1), dtype=jnp.float32)       # torch.randn(1)    per flow

    log_p = normalizing_flow_prior(z, u, w, b)
    jax.block_until_ready(log_p)

    ref = reference(z, u, w, b)
    np.testing.assert_allclose(np.asarray(log_p), np.asarray(ref),
                               rtol=1e-5, atol=1e-5)
    print("KERNEL_OK")
</pallas_src>

<mosaic_0001>
module attributes {stable_mosaic.version = 11 : i64} {
  func.func @nf_prior_kernel(%arg0: i32, %arg1: memref<32x32xf32, #tpu.memory_space<vmem>>, %arg2: memref<32x40xf32, #tpu.memory_space<vmem>>, %arg3: memref<4xf32, #tpu.memory_space<smem>>, %arg4: memref<32x1xf32, #tpu.memory_space<vmem>>) attributes {dimension_semantics = [#tpu.dimension_semantics<arbitrary>], iteration_bounds = array<i64: 1>, scalar_prefetch = 0 : i64, scratch_operands = 0 : i64, tpu.core_type = #tpu.core_type<tc>, window_params = [{pipeline_mode = #tpu.pipeline_mode<synchronous>, transform_indices = @transform_0, window_bounds = array<i64: 32, 32>}, {pipeline_mode = #tpu.pipeline_mode<synchronous>, transform_indices = @transform_1, window_bounds = array<i64: 32, 40>}, {transform_indices = @transform_2, window_bounds = array<i64: 4>}, {pipeline_mode = #tpu.pipeline_mode<synchronous>, transform_indices = @transform_3, window_bounds = array<i64: 32, 1>}]} {
    %c0 = arith.constant 0 : index
    %c0_0 = arith.constant 0 : index
    %0 = vector.load %arg1[%c0, %c0_0] : memref<32x32xf32, #tpu.memory_space<vmem>>, vector<32x32xf32>
    %c0_1 = arith.constant 0 : index
    %c0_2 = arith.constant 0 : index
    %1 = vector.load %arg2[%c0_1, %c0_2] : memref<32x40xf32, #tpu.memory_space<vmem>>, vector<32x40xf32>
    %2 = tpu.iota {dimensions = array<i32: 0>} : vector<32x32xi32>
    %3 = tpu.iota {dimensions = array<i32: 1>} : vector<32x32xi32>
    %4 = arith.cmpi eq, %2, %3 : vector<32x32xi32>
    %5 = arith.extui %4 : vector<32x32xi1> to vector<32x32xi32>
    %6 = arith.sitofp %5 : vector<32x32xi32> to vector<32x32xf32>
    %7 = arith.mulf %0, %0 : vector<32x32xf32>
    %cst = arith.constant dense<0.000000e+00> : vector<32xf32>
    %8 = vector.multi_reduction <add>, %7, %cst [1] : vector<32x32xf32> to vector<32xf32>
    %9 = vector.shape_cast %8 : vector<32xf32> to vector<32x1xf32>
    %cst_3 = arith.constant -5.000000e-01 : f32
    %10 = vector.broadcast %cst_3 : f32 to vector<32x1xf32>
    %11 = arith.mulf %10, %9 : vector<32x1xf32>
    %cst_4 = arith.constant 29.4060326 : f32
    %12 = vector.broadcast %cst_4 : f32 to vector<32x1xf32>
    %13 = arith.subf %11, %12 : vector<32x1xf32>
    %cst_5 = arith.constant 0.000000e+00 : f32
    %14 = vector.broadcast %cst_5 : f32 to vector<1x1xf32>
    %15 = vector.extract_strided_slice %1 {offsets = [3, 0], sizes = [1, 32], strides = [1, 1]} : vector<32x40xf32> to vector<1x32xf32>
    %16 = vector.extract_strided_slice %1 {offsets = [0, 35], sizes = [32, 1], strides = [1, 1]} : vector<32x40xf32> to vector<32x1xf32>
    %17 = vector.extract_strided_slice %1 {offsets = [0, 39], sizes = [32, 1], strides = [1, 1]} : vector<32x40xf32> to vector<32x1xf32>
    %c3 = arith.constant 3 : index
    %18 = memref.load %arg3[%c3] : memref<4xf32, #tpu.memory_space<smem>>
    %19 = vector.broadcast %15 : vector<1x32xf32> to vector<32x32xf32>
    %20 = arith.mulf %0, %19 : vector<32x32xf32>
    %cst_6 = arith.constant dense<0.000000e+00> : vector<32xf32>
    %21 = vector.multi_reduction <add>, %20, %cst_6 [1] : vector<32x32xf32> to vector<32xf32>
    %22 = vector.shape_cast %21 : vector<32xf32> to vector<32x1xf32>
    %23 = vector.broadcast %18 : f32 to vector<32x1xf32>
    %24 = arith.addf %22, %23 : vector<32x1xf32>
    %25 = math.tanh %24 : vector<32x1xf32>
    %26 = arith.mulf %16, %25 : vector<32x1xf32>
    %27 = vector.broadcast %26 : vector<32x1xf32> to vector<32x32xf32>
    %28 = arith.mulf %27, %6 : vector<32x32xf32>
    %cst_7 = arith.constant dense<0.000000e+00> : vector<32xf32>
    %29 = vector.multi_reduction <add>, %28, %cst_7 [0] : vector<32x32xf32> to vector<32xf32>
    %30 = vector.shape_cast %29 : vector<32xf32> to vector<1x32xf32>
    %31 = vector.broadcast %30 : vector<1x32xf32> to vector<32x32xf32>
    %32 = arith.addf %0, %31 : vector<32x32xf32>
    %33 = vector.broadcast %15 : vector<1x32xf32> to vector<32x32xf32>
    %34 = arith.mulf %32, %33 : vector<32x32xf32>
    %cst_8 = arith.constant dense<0.000000e+00> : vector<32xf32>
    %35 = vector.multi_reduction <add>, %34, %cst_8 [1] : vector<32x32xf32> to vector<32xf32>
    %36 = vector.shape_cast %35 : vector<32xf32> to vector<32x1xf32>
    %37 = vector.broadcast %18 : f32 to vector<32x1xf32>
    %38 = arith.addf %36, %37 : vector<32x1xf32>
    %39 = math.tanh %38 : vector<32x1xf32>
    %40 = arith.mulf %39, %39 : vector<32x1xf32>
    %cst_9 = arith.constant 1.000000e+00 : f32
    %41 = vector.broadcast %cst_9 : f32 to vector<32x1xf32>
    %42 = arith.subf %41, %40 : vector<32x1xf32>
    %43 = arith.mulf %17, %42 : vector<32x1xf32>
    %44 = vector.shape_cast %43 : vector<32x1xf32> to vector<1x32x1xf32>
    %cst_10 = arith.constant dense<0.000000e+00> : vector<1xf32>
    %45 = vector.multi_reduction <add>, %44, %cst_10 [1, 2] : vector<1x32x1xf32> to vector<1xf32>
    %46 = vector.shape_cast %45 : vector<1xf32> to vector<1x1x1xf32>
    %47 = vector.extract %46[0, 0, 0] : f32 from vector<1x1x1xf32>
    %48 = vector.broadcast %47 : f32 to vector<1x1xf32>
    %cst_11 = arith.constant 1.000000e+00 : f32
    %49 = vector.broadcast %cst_11 : f32 to vector<1x1xf32>
    %50 = arith.addf %49, %48 : vector<1x1xf32>
    %51 = math.absf %50 : vector<1x1xf32>
    %cst_12 = arith.constant 9.99999993E-9 : f32
    %52 = vector.broadcast %cst_12 : f32 to vector<1x1xf32>
    %53 = arith.addf %51, %52 : vector<1x1xf32>
    %54 = math.log %53 : vector<1x1xf32>
    %55 = arith.addf %14, %54 : vector<1x1xf32>
    %56 = vector.extract_strided_slice %1 {offsets = [2, 0], sizes = [1, 32], strides = [1, 1]} : vector<32x40xf32> to vector<1x32xf32>
    %57 = vector.extract_strided_slice %1 {offsets = [0, 34], sizes = [32, 1], strides = [1, 1]} : vector<32x40xf32> to vector<32x1xf32>
    %58 = vector.extract_strided_slice %1 {offsets = [0, 38], sizes = [32, 1], strides = [1, 1]} : vector<32x40xf32> to vector<32x1xf32>
    %c2 = arith.constant 2 : index
    %59 = memref.load %arg3[%c2] : memref<4xf32, #tpu.memory_space<smem>>
    %60 = vector.broadcast %56 : vector<1x32xf32> to vector<32x32xf32>
    %61 = arith.mulf %32, %60 : vector<32x32xf32>
    %cst_13 = arith.constant dense<0.000000e+00> : vector<32xf32>
    %62 = vector.multi_reduction <add>, %61, %cst_13 [1] : vector<32x32xf32> to vector<32xf32>
    %63 = vector.shape_cast %62 : vector<32xf32> to vector<32x1xf32>
    %64 = vector.broadcast %59 : f32 to vector<32x1xf32>
    %65 = arith.addf %63, %64 : vector<32x1xf32>
    %66 = math.tanh %65 : vector<32x1xf32>
    %67 = arith.mulf %57, %66 : vector<32x1xf32>
    %68 = vector.broadcast %67 : vector<32x1xf32> to vector<32x32xf32>
    %69 = arith.mulf %68, %6 : vector<32x32xf32>
    %cst_14 = arith.constant dense<0.000000e+00> : vector<32xf32>
    %70 = vector.multi_reduction <add>, %69, %cst_14 [0] : vector<32x32xf32> to vector<32xf32>
    %71 = vector.shape_cast %70 : vector<32xf32> to vector<1x32xf32>
    %72 = vector.broadcast %71 : vector<1x32xf32> to vector<32x32xf32>
    %73 = arith.addf %32, %72 : vector<32x32xf32>
    %74 = vector.broadcast %56 : vector<1x32xf32> to vector<32x32xf32>
    %75 = arith.mulf %73, %74 : vector<32x32xf32>
    %cst_15 = arith.constant dense<0.000000e+00> : vector<32xf32>
    %76 = vector.multi_reduction <add>, %75, %cst_15 [1] : vector<32x32xf32> to vector<32xf32>
    %77 = vector.shape_cast %76 : vector<32xf32> to vector<32x1xf32>
    %78 = vector.broadcast %59 : f32 to vector<32x1xf32>
    %79 = arith.addf %77, %78 : vector<32x1xf32>
    %80 = math.tanh %79 : vector<32x1xf32>
    %81 = arith.mulf %80, %80 : vector<32x1xf32>
    %cst_16 = arith.constant 1.000000e+00 : f32
    %82 = vector.broadcast %cst_16 : f32 to vector<32x1xf32>
    %83 = arith.subf %82, %81 : vector<32x1xf32>
    %84 = arith.mulf %58, %83 : vector<32x1xf32>
    %85 = vector.shape_cast %84 : vector<32x1xf32> to vector<1x32x1xf32>
    %cst_17 = arith.constant dense<0.000000e+00> : vector<1xf32>
    %86 = vector.multi_reduction <add>, %85, %cst_17 [1, 2] : vector<1x32x1xf32> to vector<1xf32>
    %87 = vector.shape_cast %86 : vector<1xf32> to vector<1x1x1xf32>
    %88 = vector.extract %87[0, 0, 0] : f32 from vector<1x1x1xf32>
    %89 = vector.broadcast %88 : f32 to vector<1x1xf32>
    %cst_18 = arith.constant 1.000000e+00 : f32
    %90 = vector.broadcast %cst_18 : f32 to vector<1x1xf32>
    %91 = arith.addf %90, %89 : vector<1x1xf32>
    %92 = math.absf %91 : vector<1x1xf32>
    %cst_19 = arith.constant 9.99999993E-9 : f32
    %93 = vector.broadcast %cst_19 : f32 to vector<1x1xf32>
    %94 = arith.addf %92, %93 : vector<1x1xf32>
    %95 = math.log %94 : vector<1x1xf32>
    %96 = arith.addf %55, %95 : vector<1x1xf32>
    %97 = vector.extract_strided_slice %1 {offsets = [1, 0], sizes = [1, 32], strides = [1, 1]} : vector<32x40xf32> to vector<1x32xf32>
    %98 = vector.extract_strided_slice %1 {offsets = [0, 33], sizes = [32, 1], strides = [1, 1]} : vector<32x40xf32> to vector<32x1xf32>
    %99 = vector.extract_strided_slice %1 {offsets = [0, 37], sizes = [32, 1], strides = [1, 1]} : vector<32x40xf32> to vector<32x1xf32>
    %c1 = arith.constant 1 : index
    %100 = memref.load %arg3[%c1] : memref<4xf32, #tpu.memory_space<smem>>
    %101 = vector.broadcast %97 : vector<1x32xf32> to vector<32x32xf32>
    %102 = arith.mulf %73, %101 : vector<32x32xf32>
    %cst_20 = arith.constant dense<0.000000e+00> : vector<32xf32>
    %103 = vector.multi_reduction <add>, %102, %cst_20 [1] : vector<32x32xf32> to vector<32xf32>
    %104 = vector.shape_cast %103 : vector<32xf32> to vector<32x1xf32>
    %105 = vector.broadcast %100 : f32 to vector<32x1xf32>
    %106 = arith.addf %104, %105 : vector<32x1xf32>
    %107 = math.tanh %106 : vector<32x1xf32>
    %108 = arith.mulf %98, %107 : vector<32x1xf32>
    %109 = vector.broadcast %108 : vector<32x1xf32> to vector<32x32xf32>
    %110 = arith.mulf %109, %6 : vector<32x32xf32>
    %cst_21 = arith.constant dense<0.000000e+00> : vector<32xf32>
    %111 = vector.multi_reduction <add>, %110, %cst_21 [0] : vector<32x32xf32> to vector<32xf32>
    %112 = vector.shape_cast %111 : vector<32xf32> to vector<1x32xf32>
    %113 = vector.broadcast %112 : vector<1x32xf32> to vector<32x32xf32>
    %114 = arith.addf %73, %113 : vector<32x32xf32>
    %115 = vector.broadcast %97 : vector<1x32xf32> to vector<32x32xf32>
    %116 = arith.mulf %114, %115 : vector<32x32xf32>
    %cst_22 = arith.constant dense<0.000000e+00> : vector<32xf32>
    %117 = vector.multi_reduction <add>, %116, %cst_22 [1] : vector<32x32xf32> to vector<32xf32>
    %118 = vector.shape_cast %117 : vector<32xf32> to vector<32x1xf32>
    %119 = vector.broadcast %100 : f32 to vector<32x1xf32>
    %120 = arith.addf %118, %119 : vector<32x1xf32>
    %121 = math.tanh %120 : vector<32x1xf32>
    %122 = arith.mulf %121, %121 : vector<32x1xf32>
    %cst_23 = arith.constant 1.000000e+00 : f32
    %123 = vector.broadcast %cst_23 : f32 to vector<32x1xf32>
    %124 = arith.subf %123, %122 : vector<32x1xf32>
    %125 = arith.mulf %99, %124 : vector<32x1xf32>
    %126 = vector.shape_cast %125 : vector<32x1xf32> to vector<1x32x1xf32>
    %cst_24 = arith.constant dense<0.000000e+00> : vector<1xf32>
    %127 = vector.multi_reduction <add>, %126, %cst_24 [1, 2] : vector<1x32x1xf32> to vector<1xf32>
    %128 = vector.shape_cast %127 : vector<1xf32> to vector<1x1x1xf32>
    %129 = vector.extract %128[0, 0, 0] : f32 from vector<1x1x1xf32>
    %130 = vector.broadcast %129 : f32 to vector<1x1xf32>
    %cst_25 = arith.constant 1.000000e+00 : f32
    %131 = vector.broadcast %cst_25 : f32 to vector<1x1xf32>
    %132 = arith.addf %131, %130 : vector<1x1xf32>
    %133 = math.absf %132 : vector<1x1xf32>
    %cst_26 = arith.constant 9.99999993E-9 : f32
    %134 = vector.broadcast %cst_26 : f32 to vector<1x1xf32>
    %135 = arith.addf %133, %134 : vector<1x1xf32>
    %136 = math.log %135 : vector<1x1xf32>
    %137 = arith.addf %96, %136 : vector<1x1xf32>
    %138 = vector.extract_strided_slice %1 {offsets = [0, 0], sizes = [1, 32], strides = [1, 1]} : vector<32x40xf32> to vector<1x32xf32>
    %139 = vector.extract_strided_slice %1 {offsets = [0, 32], sizes = [32, 1], strides = [1, 1]} : vector<32x40xf32> to vector<32x1xf32>
    %140 = vector.extract_strided_slice %1 {offsets = [0, 36], sizes = [32, 1], strides = [1, 1]} : vector<32x40xf32> to vector<32x1xf32>
    %c0_27 = arith.constant 0 : index
    %141 = memref.load %arg3[%c0_27] : memref<4xf32, #tpu.memory_space<smem>>
    %142 = vector.broadcast %138 : vector<1x32xf32> to vector<32x32xf32>
    %143 = arith.mulf %114, %142 : vector<32x32xf32>
    %cst_28 = arith.constant dense<0.000000e+00> : vector<32xf32>
    %144 = vector.multi_reduction <add>, %143, %cst_28 [1] : vector<32x32xf32> to vector<32xf32>
    %145 = vector.shape_cast %144 : vector<32xf32> to vector<32x1xf32>
    %146 = vector.broadcast %141 : f32 to vector<32x1xf32>
    %147 = arith.addf %145, %146 : vector<32x1xf32>
    %148 = math.tanh %147 : vector<32x1xf32>
    %149 = arith.mulf %139, %148 : vector<32x1xf32>
    %150 = vector.broadcast %149 : vector<32x1xf32> to vector<32x32xf32>
    %151 = arith.mulf %150, %6 : vector<32x32xf32>
    %cst_29 = arith.constant dense<0.000000e+00> : vector<32xf32>
    %152 = vector.multi_reduction <add>, %151, %cst_29 [0] : vector<32x32xf32> to vector<32xf32>
    %153 = vector.shape_cast %152 : vector<32xf32> to vector<1x32xf32>
    %154 = vector.broadcast %153 : vector<1x32xf32> to vector<32x32xf32>
    %155 = arith.addf %114, %154 : vector<32x32xf32>
    %156 = vector.broadcast %138 : vector<1x32xf32> to vector<32x32xf32>
    %157 = arith.mulf %155, %156 : vector<32x32xf32>
    %cst_30 = arith.constant dense<0.000000e+00> : vector<32xf32>
    %158 = vector.multi_reduction <add>, %157, %cst_30 [1] : vector<32x32xf32> to vector<32xf32>
    %159 = vector.shape_cast %158 : vector<32xf32> to vector<32x1xf32>
    %160 = vector.broadcast %141 : f32 to vector<32x1xf32>
    %161 = arith.addf %159, %160 : vector<32x1xf32>
    %162 = math.tanh %161 : vector<32x1xf32>
    %163 = arith.mulf %162, %162 : vector<32x1xf32>
    %cst_31 = arith.constant 1.000000e+00 : f32
    %164 = vector.broadcast %cst_31 : f32 to vector<32x1xf32>
    %165 = arith.subf %164, %163 : vector<32x1xf32>
    %166 = arith.mulf %140, %165 : vector<32x1xf32>
    %167 = vector.shape_cast %166 : vector<32x1xf32> to vector<1x32x1xf32>
    %cst_32 = arith.constant dense<0.000000e+00> : vector<1xf32>
    %168 = vector.multi_reduction <add>, %167, %cst_32 [1, 2] : vector<1x32x1xf32> to vector<1xf32>
    %169 = vector.shape_cast %168 : vector<1xf32> to vector<1x1x1xf32>
    %170 = vector.extract %169[0, 0, 0] : f32 from vector<1x1x1xf32>
    %171 = vector.broadcast %170 : f32 to vector<1x1xf32>
    %cst_33 = arith.constant 1.000000e+00 : f32
    %172 = vector.broadcast %cst_33 : f32 to vector<1x1xf32>
    %173 = arith.addf %172, %171 : vector<1x1xf32>
    %174 = math.absf %173 : vector<1x1xf32>
    %cst_34 = arith.constant 9.99999993E-9 : f32
    %175 = vector.broadcast %cst_34 : f32 to vector<1x1xf32>
    %176 = arith.addf %174, %175 : vector<1x1xf32>
    %177 = math.log %176 : vector<1x1xf32>
    %178 = arith.addf %137, %177 : vector<1x1xf32>
    %179 = vector.broadcast %178 : vector<1x1xf32> to vector<32x1xf32>
    %180 = arith.subf %13, %179 : vector<32x1xf32>
    %c0_35 = arith.constant 0 : index
    %c0_36 = arith.constant 0 : index
    %181 = vector.load %arg4[%c0_35, %c0_36] : memref<32x1xf32, #tpu.memory_space<vmem>>, vector<32x1xf32>
    tpu.vector_store %arg4[%c0_35, %c0_36], %180 {strides = array<i32>} : memref<32x1xf32, #tpu.memory_space<vmem>>, vector<32x1xf32>,
    return
  }
  func.func @transform_0(%arg0: i32) -> (i32, i32) {
    %c0_i32 = arith.constant 0 : i32
    %c0_i32_0 = arith.constant 0 : i32
    %c0_i32_1 = arith.constant 0 : i32
    return %c0_i32, %c0_i32_0 : i32, i32
  }
  func.func @transform_1(%arg0: i32) -> (i32, i32) {
    %c0_i32 = arith.constant 0 : i32
    %c0_i32_0 = arith.constant 0 : i32
    %c0_i32_1 = arith.constant 0 : i32
    return %c0_i32, %c0_i32_0 : i32, i32
  }
  func.func @transform_2(%arg0: i32) -> i32 {
    %c0_i32 = arith.constant 0 : i32
    %c0_i32_0 = arith.constant 0 : i32
    return %c0_i32 : i32
  }
  func.func @transform_3(%arg0: i32) -> (i32, i32) {
    %c0_i32 = arith.constant 0 : i32
    %c0_i32_0 = arith.constant 0 : i32
    %c0_i32_1 = arith.constant 0 : i32
    return %c0_i32, %c0_i32_0 : i32, i32
  }
}

</mosaic_0001>

<bundles_post_ra>
// kernel: tpu_custom_call.1
= control target key start
LH: loop header
LB: loop body
LE: loop exit
PB: predicated region body
PF: predicated region fallthrough
CT: control target
= control target key end

     0   :  { %8 = vsyncpa [#allocation3], 0  ;;  %s1291_s0 = inlined_call_operand.hbm [shape: f32[32,32], index: 0, kind: input, shape index: {}]   ;;  %s1292_s1 = inlined_call_operand.hbm [shape: f32[32,40], index: 1, kind: input, shape index: {}]   ;;  %s1293_s2 = inlined_call_operand.vmem [shape: f32[4], index: 2, kind: input, shape index: {}]   ;;  %s1294_s3 = inlined_call_operand.vmem [shape: f32[32,1], index: 3, kind: output, shape index: {}]  }
   0x1   :  { %9 = vsyncpa [#allocation6], 0 }
   0x2   :  { %10 = vsyncpa [#allocation4], 0  ;;  %s900_s12 = smov [#allocation2]   ;;  %s838_s16 = scalar_lea.hbm %s1291_s0, 512 }
   0x3   :  { %s16_s13 = sshll.u32 %s900_s12, 4  ;;  %p839_p0 = scmp.ne.s32.totalorder %s1291_s0, %s838_s16  ;;  %s17_s13 = int_to_ptr.vmem [resolvable:$true] %s16_s13 }
   0x4   :  { %p842_p1 = scmp.lt.u32.totalorder %s838_s16, %s1291_s0 }
   0x6   :  { %p844_p2 = pnand %p842_p1, %p839_p0 }
   0x8   :  { %847 = shalt.err (!%p844_p2)
}
   0x9   :  { %s848_s21 = scalar_lea.vmem %s17_s13, 512  ;;  %p853_p4 = scmp.lt.s32.totalorder %s17_s13, %s17_s13 }
   0xa   :  { %p849_p3 = scmp.ne.s32.totalorder %s17_s13, %s848_s21  ;;  %p854_p5 = scmp.lt.s32.totalorder %s848_s21, %s848_s21 }
   0xc   :  { %p855_p6 = por %p854_p5, %p853_p4 }
   0xe   :  { %p856_p7 = pnand %p855_p6, %p849_p3 }
  0x10   :  { %859 = shalt.err (!%p856_p7)
}
  0x11   :  { %s901_s22 = smov 128   ;;  %s902_s23 = smov 8  }
  0x12   :  { %22 = dma.hbm_to_vmem [thread:$0]  %s1291_s0, 512, %s17_s13, [#allocation3], %s901_s22, %s901_s22, %s902_s23  }
  0x13   :  { %s903_s26 = smov [#allocation5]   ;;  %s41_s30 = sshll.u32 %s1293_s2, 4  ;;  %s42_s30 = int_to_ptr.vmem [resolvable:$true] %s41_s30 }
  0x14   :  { %s28_s27 = sshll.u32 %s903_s26, 4  ;;  %s860_s6 = scalar_lea.hbm %s1292_s1, 512  ;;  %s29_s27 = int_to_ptr.vmem [resolvable:$true] %s28_s27 }
  0x15   :  { %p861_p8 = scmp.ne.s32.totalorder %s1292_s1, %s860_s6  ;;  %p864_p9 = scmp.lt.u32.totalorder %s860_s6, %s1292_s1 }
  0x17   :  { %p866_p10 = pnand %p864_p9, %p861_p8 }
  0x19   :  { %869 = shalt.err (!%p866_p10)
}
  0x1a   :  { %s870_s0 = scalar_lea.vmem %s29_s27, 512  ;;  %p875_p12 = scmp.lt.s32.totalorder %s29_s27, %s29_s27 }
  0x1b   :  { %p871_p11 = scmp.ne.s32.totalorder %s29_s27, %s870_s0  ;;  %p876_p13 = scmp.lt.s32.totalorder %s870_s0, %s870_s0 }
  0x1d   :  { %p877_p0 = por %p876_p13, %p875_p12 }
  0x1f   :  { %p878_p1 = pnand %p877_p0, %p871_p11 }
  0x21   :  { %881 = shalt.err (!%p878_p1)
}
  0x22   :  { %34 = dma.hbm_to_vmem [thread:$0]  %s1292_s1, 512, %s29_s27, [#allocation6], %s901_s22, %s901_s22, %s902_s23  }
  0x23   :  { %s882_s12 = scalar_lea.vmem %s42_s30, 16  ;;  %p887_p3 = scmp.lt.s32.totalorder %s42_s30, %s42_s30 }
  0x24   :  { %p883_p2 = scmp.ne.s32.totalorder %s42_s30, %s882_s12  ;;  %p888_p4 = scmp.lt.s32.totalorder %s882_s12, %s882_s12 }
  0x26   :  { %p889_p5 = por %p888_p4, %p887_p3 }
  0x28   :  { %p890_p6 = pnand %p889_p5, %p883_p2 }
  0x2a   :  { %893 = shalt.err (!%p890_p6)
}
  0x2b   :  { %s904_s13 = smov [#allocation7]  }
  0x2c   :  { %44 = dma.vmem_to_smem %s42_s30, 16, %s904_s13, [#allocation4]  }
  0x2d   :  { %894 = dma.done.wait [#allocation3], 512  }
  0x2e   :  { %895 = vsyncadd [#allocation3], 4294966784 }
  0x2f   :  { %896 = dma.done.wait [#allocation6], 512  }
  0x30   :  { %897 = vsyncadd [#allocation6], 4294966784 }
  0x31   :  { %898 = dma.done.wait [#allocation4], 16  }
  0x32   :  { %899 = vsyncadd [#allocation4], 4294967280 }
  0x33   :  { %54 = sfence }
  0x34   :  { %v63_v0 = vlaneseq  ;;  %v963_v2 = vld [vmem:[#allocation5] sm:$0xff]  ;;  %v968_v5 = vld [vmem:[#allocation2 + $0x8] sm:$0xff]  ;;  %v970_v6 = vld [vmem:[#allocation2 + $0x10] sm:$0xff]  ;;  %vm86_vm0 = vcmask 261120   ;;  %v905_v17 = vmov 35   ;;  %s731_s1 = sld [smem:[#allocation7 + $0x3]] }
  0x35   :  { %v965_v3 = vld [vmem:[#allocation2] sm:$0xff]  ;;  %v972_v7 = vld [vmem:[#allocation2 + $0x18] sm:$0xff]  ;;  %756 = vset.pattern.permute.xlu0 %v905_v17  ;;  %757 = vset.pattern.permute.xlu1 %v905_v17  ;;  %v996_v29 = vld [vmem:[#allocation5 + $0x8] sm:$0xff]  ;;  %v906_v41 = vmov 0.0   ;;  %s732_s14 = sld [smem:[#allocation7 + $0x2]]  ;;  %s733_s15 = sld [smem:[#allocation7 + $0x1]] }
  0x36   :  { %v961_v1 = vshrl.u32 %v63_v0, 7  ;;  %v998_v32 = vld [vmem:[#allocation5 + $0x10] sm:$0xff]  ;;  %v1002_v36 = vld [vmem:[#allocation5 + $0x18] sm:$0xff]  ;;  %v69_v39 = vand.u32 127, %v63_v0  ;;  %s558_s16 = sld [smem:[#allocation7]]  ;;  %s910_s17 = smov 89  }
  0x37   :  { %s911_s18 = smov 90   ;;  %s912_s19 = smov 91   ;;  %vm234_vm5 = vcmask 7168  }
  0x38   :  { %v110_v4 = vsub.s32 3, %v961_v1  ;;  %v65_v38 = vadd.s32 8, %v961_v1  ;;  %v66_v40 = vadd.s32 16, %v961_v1  ;;  %vm70_vm2 = vcmp.eq.s32.totalorder %v961_v1, %v69_v39  ;;  %s913_s20 = smov 92  }
  0x39   :  { %v67_v43 = vadd.s32 24, %v961_v1  ;;  %v1011_v44 = vsel %vm70_vm2, 1.0, %v906_v41 }
  0x3a   :  { %v975_v8 = vrot.slane %v963_v2, %v110_v4  ;;  %v989_v18 = vstv %s731_s1  ;;  %vm71_vm1 = vcmp.eq.s32.totalorder %v65_v38, %v69_v39  ;;  %vm72_vm3 = vcmp.eq.s32.totalorder %v66_v40, %v69_v39 }
  0x3b   :  { %v1008_v42 = vsel %vm71_vm1, 1.0, %v906_v41  ;;  %v1014_v48 = vsel %vm72_vm3, 1.0, %v906_v41  ;;  %vm73_vm4 = vcmp.eq.s32.totalorder %v67_v43, %v69_v39 }
  0x3c   :  { %v112_v9 = vmul.f32 %v975_v8, %v965_v3  ;;  %v113_v10 = vmul.f32 %v975_v8, %v968_v5  ;;  %v114_v11 = vmul.f32 %v975_v8, %v970_v6  ;;  %v115_v12 = vmul.f32 %v975_v8, %v972_v7 }
  0x3d   :  { %v1019_v53 = vsel %vm73_vm4, 1.0, %v906_v41 }
  0x3e   :  { %v116_v13 = vsel %vm86_vm0, %v112_v9, 0.0  ;;  %v122_v14 = vsel %vm86_vm0, %v114_v11, 0.0  ;;  %v119_v15 = vsel %vm86_vm0, %v113_v10, 0.0  ;;  %v125_v16 = vsel %vm86_vm0, %v115_v12, 0.0 }
  0x3f   :  { %117 = vadd.xlane.f32.xlu0 %v116_v13  ;;  %123 = vadd.xlane.f32.xlu1 %v122_v14  ;;  %v261_v9 = vsub.s32 2, %v961_v1 }
  0x41   :  { %v1027_v12 = vrot.slane %v963_v2, %v261_v9 }
  0x43   :  { %120 = vadd.xlane.f32.xlu0 %v119_v15  ;;  %126 = vadd.xlane.f32.xlu1 %v125_v16 }
  0xcc   :  { %v118_v19 = vpop.xlane.xlu0 %117  ;;  %v124_v20 = vpop.xlane.xlu1 %123 }
  0xcd   :  { %v129_v21 = vadd.f32 %v989_v18, %v118_v19  ;;  %v131_v22 = vadd.f32 %v989_v18, %v124_v20 }
  0xcf   :  { %764 = vtanh.f32 %v129_v21 }
  0xd0   :  { %v121_v23 = vpop.xlane.xlu0 %120  ;;  %v127_v24 = vpop.xlane.xlu1 %126  ;;  %766 = vtanh.f32 %v131_v22 }
  0xd1   :  { %v130_v25 = vadd.f32 %v989_v18, %v121_v23  ;;  %v132_v26 = vadd.f32 %v989_v18, %v127_v24  ;;  %v907_v24 = vmov 34  }
  0xd3   :  { %768 = vtanh.f32 %v130_v25  ;;  %v1053_v25 = vstv %s732_s14 }
  0xd4   :  { %770 = vtanh.f32 %v132_v26 }
  0xd9   :  { %v765_v27 = vpop.eup %764 }
  0xda   :  { %v137_v28 = vmul.f32 %v765_v27, %v963_v2  ;;  %v767_v30 = vpop.eup %766 }
  0xdb   :  { %v139_v34 = vmul.f32 %v767_v30, %v998_v32 }
  0xdc   :  { %143 = vperm.xlu0 %756, %v137_v28  }
  0xdd   :  { %v769_v31 = vpop.eup %768 }
  0xde   :  { %v138_v33 = vmul.f32 %v769_v31, %v996_v29  ;;  %v771_v35 = vpop.eup %770 }
  0xdf   :  { %v140_v37 = vmul.f32 %v771_v35, %v1002_v36 }
  0xe0   :  { %148 = vperm.xlu1 %757, %v138_v33   ;;  %759 = vset.pattern.permute.xlu0 %v907_v24 }
  0xe4   :  { %153 = vperm.xlu1 %757, %v139_v34  }
  0xe8   :  { %158 = vperm.xlu1 %757, %v140_v37  }
  0xec   :  { %758 = vset.pattern.permute.xlu1 %v907_v24 }
 0x15b   :  { %v144_v45 = vpop.permute.xlu0 %143 }
 0x15c   :  { %v161_v49 = vmul.f32 %v1011_v44, %v144_v45 }
 0x15e   :  { %v165_v54 = vsel %vm86_vm0, %v161_v49, 0.0 }
 0x15f   :  { %v149_v46 = vpop.permute.xlu1 %148 }
 0x160   :  { %v162_v47 = vmul.f32 %v1008_v42, %v149_v46 }
 0x162   :  { %v166_v51 = vsel %vm86_vm0, %v162_v47, 0.0 }
 0x163   :  { %v154_v50 = vpop.permute.xlu1 %153  ;;  %v167_v56 = vadd.f32 %v166_v51, %v165_v54 }
 0x164   :  { %v163_v52 = vmul.f32 %v1014_v48, %v154_v50 }
 0x166   :  { %v168_v55 = vsel %vm86_vm0, %v163_v52, 0.0 }
 0x167   :  { %v159_v57 = vpop.permute.xlu1 %158  ;;  %v169_v59 = vadd.f32 %v168_v55, %v167_v56 }
 0x168   :  { %v164_v58 = vmul.f32 %v1019_v53, %v159_v57 }
 0x16a   :  { %v170_v60 = vsel %vm86_vm0, %v164_v58, 0.0 }
 0x16b   :  { %v171_v61 = vadd.f32 %v170_v60, %v169_v59 }
 0x16d   :  { %v172_v62 = vrot.slane %v171_v61, 4 }
 0x16f   :  { %v173_v63 = vadd.f32 %v172_v62, %v171_v61 }
 0x171   :  { %v174_v0 = vrot.slane %v173_v63, 2 }
 0x173   :  { %v175_v4 = vadd.f32 %v174_v0, %v173_v63 }
 0x175   :  { %v176_v10 = vrot.slane %v175_v4, 1 }
 0x177   :  { %v177_v11 = vadd.f32 %v176_v10, %v175_v4 }
 0x179   :  { %v1030_v13 = vadd.f32 %v177_v11, %v968_v5  ;;  %v1033_v14 = vadd.f32 %v177_v11, %v965_v3  ;;  %v1036_v15 = vadd.f32 %v177_v11, %v970_v6  ;;  %v1047_v22 = vadd.f32 %v177_v11, %v972_v7 }
 0x17a   :  { %v411_v11 = vsub.s32 1, %v961_v1 }
 0x17b   :  { %v264_v16 = vmul.f32 %v1027_v12, %v1030_v13  ;;  %v263_v17 = vmul.f32 %v1027_v12, %v1033_v14  ;;  %v265_v21 = vmul.f32 %v1027_v12, %v1036_v15  ;;  %v266_v6 = vmul.f32 %v1027_v12, %v1047_v22 }
 0x17d   :  { %v270_v19 = vsel %vm86_vm0, %v264_v16, 0.0  ;;  %v267_v20 = vsel %vm86_vm0, %v263_v17, 0.0  ;;  %v273_v3 = vsel %vm86_vm0, %v265_v21, 0.0  ;;  %v276_v23 = vsel %vm86_vm0, %v266_v6, 0.0 }
 0x17e   :  { %271 = vadd.xlane.f32.xlu0 %v270_v19  ;;  %268 = vadd.xlane.f32.xlu1 %v267_v20  ;;  %v1073_v19 = vrot.slane %v963_v2, %v411_v11 }
 0x182   :  { %274 = vadd.xlane.f32.xlu1 %v273_v3 }
 0x186   :  { %277 = vadd.xlane.f32.xlu1 %v276_v23 }
 0x20b   :  { %v272_v26 = vpop.xlane.xlu0 %271  ;;  %v269_v27 = vpop.xlane.xlu1 %268 }
 0x20c   :  { %v281_v28 = vadd.f32 %v1053_v25, %v272_v26  ;;  %v280_v30 = vadd.f32 %v1053_v25, %v269_v27 }
 0x20e   :  { %772 = vtanh.f32 %v281_v28 }
 0x20f   :  { %774 = vtanh.f32 %v280_v30  ;;  %v275_v31 = vpop.xlane.xlu1 %274 }
 0x210   :  { %v282_v33 = vadd.f32 %v1053_v25, %v275_v31 }
 0x212   :  { %776 = vtanh.f32 %v282_v33 }
 0x213   :  { %v278_v34 = vpop.xlane.xlu1 %277 }
 0x214   :  { %v283_v35 = vadd.f32 %v1053_v25, %v278_v34  ;;  %v908_v34 = vmov 33  }
 0x216   :  { %778 = vtanh.f32 %v283_v35  ;;  %v1099_v35 = vstv %s733_s15 }
 0x218   :  { %v773_v37 = vpop.eup %772 }
 0x219   :  { %v775_v38 = vpop.eup %774  ;;  %v289_v39 = vmul.f32 %v773_v37, %v996_v29 }
 0x21a   :  { %v288_v40 = vmul.f32 %v775_v38, %v963_v2 }
 0x21b   :  { %299 = vperm.xlu0 %759, %v289_v39  }
 0x21c   :  { %v777_v41 = vpop.eup %776  ;;  %294 = vperm.xlu1 %758, %v288_v40  }
 0x21d   :  { %v290_v43 = vmul.f32 %v777_v41, %v998_v32 }
 0x21f   :  { %761 = vset.pattern.permute.xlu0 %v908_v34 }
 0x220   :  { %v779_v45 = vpop.eup %778  ;;  %304 = vperm.xlu1 %758, %v290_v43  }
 0x221   :  { %v291_v46 = vmul.f32 %v779_v45, %v1002_v36 }
 0x224   :  { %309 = vperm.xlu1 %758, %v291_v46  }
 0x228   :  { %760 = vset.pattern.permute.xlu1 %v908_v34 }
 0x29a   :  { %v300_v47 = vpop.permute.xlu0 %299 }
 0x29b   :  { %v295_v49 = vpop.permute.xlu1 %294  ;;  %v313_v50 = vmul.f32 %v1008_v42, %v300_v47 }
 0x29c   :  { %v312_v51 = vmul.f32 %v1011_v44, %v295_v49 }
 0x29d   :  { %v317_v54 = vsel %vm86_vm0, %v313_v50, 0.0 }
 0x29e   :  { %v316_v55 = vsel %vm86_vm0, %v312_v51, 0.0 }
 0x29f   :  { %v305_v52 = vpop.permute.xlu1 %304  ;;  %v318_v58 = vadd.f32 %v317_v54, %v316_v55 }
 0x2a0   :  { %v314_v56 = vmul.f32 %v1014_v48, %v305_v52 }
 0x2a2   :  { %v319_v57 = vsel %vm86_vm0, %v314_v56, 0.0 }
 0x2a3   :  { %v310_v59 = vpop.permute.xlu1 %309  ;;  %v320_v61 = vadd.f32 %v319_v57, %v318_v58 }
 0x2a4   :  { %v315_v60 = vmul.f32 %v1019_v53, %v310_v59 }
 0x2a6   :  { %v321_v62 = vsel %vm86_vm0, %v315_v60, 0.0 }
 0x2a7   :  { %v322_v63 = vadd.f32 %v321_v62, %v320_v61 }
 0x2a9   :  { %v323_v0 = vrot.slane %v322_v63, 4 }
 0x2ab   :  { %v324_v4 = vadd.f32 %v323_v0, %v322_v63 }
 0x2ad   :  { %v325_v9 = vrot.slane %v324_v4, 2 }
 0x2af   :  { %v326_v10 = vadd.f32 %v325_v9, %v324_v4 }
 0x2b1   :  { %v327_v16 = vrot.slane %v326_v10, 1 }
 0x2b3   :  { %v328_v17 = vadd.f32 %v327_v16, %v326_v10 }
 0x2b5   :  { %v1076_v20 = vadd.f32 %v328_v17, %v1030_v13  ;;  %v1079_v21 = vadd.f32 %v328_v17, %v1033_v14  ;;  %v1082_v3 = vadd.f32 %v328_v17, %v1036_v15  ;;  %v1093_v28 = vadd.f32 %v328_v17, %v1047_v22 }
 0x2b7   :  { %v414_v6 = vmul.f32 %v1073_v19, %v1076_v20  ;;  %v413_v23 = vmul.f32 %v1073_v19, %v1079_v21  ;;  %v415_v27 = vmul.f32 %v1073_v19, %v1082_v3  ;;  %v416_v31 = vmul.f32 %v1073_v19, %v1093_v28 }
 0x2b9   :  { %v420_v24 = vsel %vm86_vm0, %v414_v6, 0.0  ;;  %v417_v26 = vsel %vm86_vm0, %v413_v23, 0.0  ;;  %v423_v30 = vsel %vm86_vm0, %v415_v27, 0.0  ;;  %v426_v33 = vsel %vm86_vm0, %v416_v31, 0.0 }
 0x2ba   :  { %421 = vadd.xlane.f32.xlu0 %v420_v24  ;;  %418 = vadd.xlane.f32.xlu1 %v417_v26 }
 0x2be   :  { %424 = vadd.xlane.f32.xlu1 %v423_v30  ;;  %v561_v30 = vsub.s32 0, %v961_v1 }
 0x2c0   :  { %v1119_v34 = vrot.slane %v963_v2, %v561_v30  ;;  %v183_v30 = vmul.f32 %v1030_v13, %v975_v8 }
 0x2c2   :  { %427 = vadd.xlane.f32.xlu1 %v426_v33 }
 0x347   :  { %v422_v37 = vpop.xlane.xlu0 %421  ;;  %v419_v38 = vpop.xlane.xlu1 %418 }
 0x348   :  { %v431_v39 = vadd.f32 %v1099_v35, %v422_v37  ;;  %v430_v40 = vadd.f32 %v1099_v35, %v419_v38 }
 0x34a   :  { %780 = vtanh.f32 %v431_v39 }
 0x34b   :  { %782 = vtanh.f32 %v430_v40  ;;  %v425_v41 = vpop.xlane.xlu1 %424 }
 0x34c   :  { %v432_v43 = vadd.f32 %v1099_v35, %v425_v41 }
 0x34e   :  { %784 = vtanh.f32 %v432_v43 }
 0x34f   :  { %v428_v45 = vpop.xlane.xlu1 %427 }
 0x350   :  { %v433_v46 = vadd.f32 %v1099_v35, %v428_v45 }
 0x352   :  { %786 = vtanh.f32 %v433_v46 }
 0x354   :  { %v781_v47 = vpop.eup %780 }
 0x355   :  { %v783_v49 = vpop.eup %782  ;;  %v439_v50 = vmul.f32 %v781_v47, %v996_v29 }
 0x356   :  { %v438_v51 = vmul.f32 %v783_v49, %v963_v2 }
 0x357   :  { %449 = vperm.xlu0 %761, %v439_v50  }
 0x358   :  { %v785_v52 = vpop.eup %784  ;;  %444 = vperm.xlu1 %760, %v438_v51   ;;  %v909_v51 = vmov 32  }
 0x359   :  { %v440_v54 = vmul.f32 %v785_v52, %v998_v32  ;;  %v1145_v52 = vstv %s558_s16 }
 0x35b   :  { %763 = vset.pattern.permute.xlu0 %v909_v51 }
 0x35c   :  { %v787_v55 = vpop.eup %786  ;;  %454 = vperm.xlu1 %760, %v440_v54  }
 0x35d   :  { %v441_v56 = vmul.f32 %v787_v55, %v1002_v36 }
 0x360   :  { %459 = vperm.xlu1 %760, %v441_v56  }
 0x364   :  { %762 = vset.pattern.permute.xlu1 %v909_v51 }
 0x3d6   :  { %v450_v57 = vpop.permute.xlu0 %449 }
 0x3d7   :  { %v445_v58 = vpop.permute.xlu1 %444  ;;  %v463_v59 = vmul.f32 %v1008_v42, %v450_v57 }
 0x3d8   :  { %v462_v60 = vmul.f32 %v1011_v44, %v445_v58 }
 0x3d9   :  { %v467_v62 = vsel %vm86_vm0, %v463_v59, 0.0 }
 0x3da   :  { %v466_v63 = vsel %vm86_vm0, %v462_v60, 0.0 }
 0x3db   :  { %v455_v61 = vpop.permute.xlu1 %454  ;;  %v468_v9 = vadd.f32 %v467_v62, %v466_v63 }
 0x3dc   :  { %v464_v0 = vmul.f32 %v1014_v48, %v455_v61 }
 0x3de   :  { %v469_v4 = vsel %vm86_vm0, %v464_v0, 0.0 }
 0x3df   :  { %v460_v10 = vpop.permute.xlu1 %459  ;;  %v470_v16 = vadd.f32 %v469_v4, %v468_v9 }
 0x3e0   :  { %v465_v11 = vmul.f32 %v1019_v53, %v460_v10 }
 0x3e2   :  { %v471_v17 = vsel %vm86_vm0, %v465_v11, 0.0 }
 0x3e3   :  { %v472_v6 = vadd.f32 %v471_v17, %v470_v16  ;;  %v333_v17 = vmul.f32 %v1079_v21, %v1027_v12 }
 0x3e5   :  { %v473_v23 = vrot.slane %v472_v6, 4 }
 0x3e7   :  { %v474_v24 = vadd.f32 %v473_v23, %v472_v6  ;;  %v337_v6 = vsel %vm86_vm0, %v333_v17, 0.0 }
 0x3e9   :  { %v475_v26 = vrot.slane %v474_v24, 2 }
 0x3eb   :  { %v476_v27 = vadd.f32 %v475_v26, %v474_v24  ;;  %v182_v26 = vmul.f32 %v1033_v14, %v975_v8 }
 0x3ed   :  { %v477_v31 = vrot.slane %v476_v27, 1 }
 0x3ef   :  { %v478_v33 = vadd.f32 %v477_v31, %v476_v27  ;;  %v186_v27 = vsel %vm86_vm0, %v182_v26, 0.0  ;;  %v334_v31 = vmul.f32 %v1076_v20, %v1027_v12 }
 0x3f1   :  { %v1122_v37 = vadd.f32 %v478_v33, %v1076_v20  ;;  %v1125_v38 = vadd.f32 %v478_v33, %v1079_v21  ;;  %v1128_v39 = vadd.f32 %v478_v33, %v1082_v3  ;;  %v1139_v46 = vadd.f32 %v478_v33, %v1093_v28 }
 0x3f2   :  { %v189_v21 = vsel %vm86_vm0, %v183_v30, 0.0  ;;  %v340_v33 = vsel %vm86_vm0, %v334_v31, 0.0 }
 0x3f3   :  { %v564_v40 = vmul.f32 %v1119_v34, %v1122_v37  ;;  %v563_v1 = vmul.f32 %v1119_v34, %v1125_v38  ;;  %v565_v45 = vmul.f32 %v1119_v34, %v1128_v39  ;;  %v566_v49 = vmul.f32 %v1119_v34, %v1139_v46 }
 0x3f4   :  { %v485_v23 = vmul.f32 %v1128_v39, %v1073_v19 }
 0x3f5   :  { %v570_v41 = vsel %vm86_vm0, %v564_v40, 0.0  ;;  %v567_v43 = vsel %vm86_vm0, %v563_v1, 0.0  ;;  %v573_v47 = vsel %vm86_vm0, %v565_v45, 0.0  ;;  %v576_v50 = vsel %vm86_vm0, %v566_v49, 0.0 }
 0x3f6   :  { %571 = vadd.xlane.f32.xlu0 %v570_v41  ;;  %568 = vadd.xlane.f32.xlu1 %v567_v43  ;;  %v493_v24 = vsel %vm86_vm0, %v485_v23, 0.0  ;;  %v184_v40 = vmul.f32 %v1036_v15, %v975_v8  ;;  %v335_v1 = vmul.f32 %v1082_v3, %v1027_v12  ;;  %v483_v41 = vmul.f32 %v1125_v38, %v1073_v19 }
 0x3f7   :  { %v484_v43 = vmul.f32 %v1122_v37, %v1073_v19  ;;  %v185_v45 = vmul.f32 %v1047_v22, %v975_v8 }
 0x3f8   :  { %v192_v14 = vsel %vm86_vm0, %v184_v40, 0.0  ;;  %v343_v13 = vsel %vm86_vm0, %v335_v1, 0.0  ;;  %v487_v20 = vsel %vm86_vm0, %v483_v41, 0.0 }
 0x3f9   :  { %v490_v15 = vsel %vm86_vm0, %v484_v43, 0.0  ;;  %v195_v3 = vsel %vm86_vm0, %v185_v45, 0.0 }
 0x3fa   :  { %574 = vadd.xlane.f32.xlu1 %v573_v47  ;;  %v336_v47 = vmul.f32 %v1093_v28, %v1027_v12 }
 0x3fc   :  { %v346_v49 = vsel %vm86_vm0, %v336_v47, 0.0 }
 0x3fe   :  { %577 = vadd.xlane.f32.xlu1 %v576_v50  ;;  %v486_v50 = vmul.f32 %v1139_v46, %v1073_v19 }
 0x400   :  { %v496_v51 = vsel %vm86_vm0, %v486_v50, 0.0 }
 0x483   :  { %v572_v54 = vpop.xlane.xlu0 %571  ;;  %v569_v55 = vpop.xlane.xlu1 %568 }
 0x484   :  { %v580_v56 = vadd.f32 %v1145_v52, %v569_v55  ;;  %v581_v57 = vadd.f32 %v1145_v52, %v572_v54 }
 0x486   :  { %788 = vtanh.f32 %v580_v56 }
 0x487   :  { %v575_v58 = vpop.xlane.xlu1 %574  ;;  %790 = vtanh.f32 %v581_v57 }
 0x488   :  { %v582_v59 = vadd.f32 %v1145_v52, %v575_v58 }
 0x48a   :  { %792 = vtanh.f32 %v582_v59 }
 0x48b   :  { %v578_v60 = vpop.xlane.xlu1 %577 }
 0x48c   :  { %v583_v61 = vadd.f32 %v1145_v52, %v578_v60 }
 0x48e   :  { %794 = vtanh.f32 %v583_v61 }
 0x490   :  { %v789_v62 = vpop.eup %788 }
 0x491   :  { %v588_v63 = vmul.f32 %v789_v62, %v963_v2  ;;  %v791_v0 = vpop.eup %790 }
 0x492   :  { %v589_v10 = vmul.f32 %v791_v0, %v996_v29 }
 0x493   :  { %594 = vperm.xlu1 %762, %v588_v63  }
 0x494   :  { %v793_v4 = vpop.eup %792 }
 0x495   :  { %v590_v9 = vmul.f32 %v793_v4, %v998_v32 }
 0x497   :  { %604 = vperm.xlu0 %763, %v590_v9   ;;  %599 = vperm.xlu1 %762, %v589_v10  }
 0x498   :  { %v795_v11 = vpop.eup %794 }
 0x499   :  { %v591_v16 = vmul.f32 %v795_v11, %v1002_v36 }
 0x49b   :  { %609 = vperm.xlu1 %762, %v591_v16  }
 0x4b6   :  { %338 = vadd.xlane.f32.xlu0 %v337_v6 }
 0x4ba   :  { %494 = vadd.xlane.f32.xlu0 %v493_v24 }
 0x4bf   :  { %187 = vadd.xlane.f32.xlu1 %v186_v27 }
 0x4c3   :  { %190 = vadd.xlane.f32.xlu1 %v189_v21 }
 0x4c7   :  { %341 = vadd.xlane.f32.xlu1 %v340_v33 }
 0x4cb   :  { %193 = vadd.xlane.f32.xlu1 %v192_v14 }
 0x4cf   :  { %344 = vadd.xlane.f32.xlu1 %v343_v13 }
 0x4d3   :  { %488 = vadd.xlane.f32.xlu1 %v487_v20 }
 0x4d7   :  { %491 = vadd.xlane.f32.xlu1 %v490_v15 }
 0x4db   :  { %196 = vadd.xlane.f32.xlu1 %v195_v3 }
 0x4df   :  { %347 = vadd.xlane.f32.xlu1 %v346_v49 }
 0x4e3   :  { %497 = vadd.xlane.f32.xlu1 %v496_v51 }
 0x512   :  { %v595_v54 = vpop.permute.xlu1 %594 }
 0x513   :  { %v612_v55 = vmul.f32 %v1011_v44, %v595_v54 }
 0x515   :  { %v616_v12 = vsel %vm86_vm0, %v612_v55, 0.0 }
 0x516   :  { %v605_v8 = vpop.permute.xlu0 %604  ;;  %v600_v22 = vpop.permute.xlu1 %599 }
 0x517   :  { %v614_v56 = vmul.f32 %v1014_v48, %v605_v8  ;;  %v613_v57 = vmul.f32 %v1008_v42, %v600_v22 }
 0x519   :  { %v617_v28 = vsel %vm86_vm0, %v613_v57, 0.0  ;;  %v619_v19 = vsel %vm86_vm0, %v614_v56, 0.0 }
 0x51a   :  { %v618_v58 = vadd.f32 %v617_v28, %v616_v12  ;;  %v610_v59 = vpop.permute.xlu1 %609 }
 0x51b   :  { %v615_v60 = vmul.f32 %v1019_v53, %v610_v59 }
 0x51c   :  { %v620_v61 = vadd.f32 %v619_v19, %v618_v58 }
 0x51d   :  { %v621_v62 = vsel %vm86_vm0, %v615_v60, 0.0 }
 0x51e   :  { %v622_v44 = vadd.f32 %v621_v62, %v620_v61 }
 0x520   :  { %v623_v63 = vrot.slane %v622_v44, 4 }
 0x522   :  { %v624_v0 = vadd.f32 %v623_v63, %v622_v44 }
 0x524   :  { %v625_v4 = vrot.slane %v624_v0, 2 }
 0x526   :  { %v626_v48 = vadd.f32 %v625_v4, %v624_v0 }
 0x528   :  { %v627_v9 = vrot.slane %v626_v48, 1 }
 0x52a   :  { %v628_v42 = vadd.f32 %v627_v9, %v626_v48 }
 0x52c   :  { %v630_v10 = vadd.f32 %v628_v42, %v1122_v37  ;;  %v629_v11 = vadd.f32 %v628_v42, %v1125_v38  ;;  %v631_v16 = vadd.f32 %v628_v42, %v1128_v39  ;;  %v632_v17 = vadd.f32 %v628_v42, %v1139_v46 }
 0x52e   :  { %v634_v53 = vmul.f32 %v630_v10, %v1119_v34  ;;  %v633_v6 = vmul.f32 %v629_v11, %v1119_v34  ;;  %v635_v26 = vmul.f32 %v631_v16, %v1119_v34  ;;  %v636_v27 = vmul.f32 %v632_v17, %v1119_v34 }
 0x530   :  { %v640_v23 = vsel %vm86_vm0, %v634_v53, 0.0  ;;  %v637_v24 = vsel %vm86_vm0, %v633_v6, 0.0  ;;  %v643_v37 = vsel %vm86_vm0, %v635_v26, 0.0  ;;  %v646_v38 = vsel %vm86_vm0, %v636_v27, 0.0 }
 0x531   :  { %641 = vadd.xlane.f32.xlu0 %v640_v23  ;;  %638 = vadd.xlane.f32.xlu1 %v637_v24 }
 0x535   :  { %644 = vadd.xlane.f32.xlu0 %v643_v37  ;;  %647 = vadd.xlane.f32.xlu1 %v646_v38 }
 0x543   :  { %v339_v39 = vpop.xlane.xlu0 %338 }
 0x544   :  { %v349_v30 = vadd.f32 %v339_v39, %v1053_v25 }
 0x547   :  { %v495_v56 = vpop.xlane.xlu0 %494 }
 0x548   :  { %v501_v59 = vadd.f32 %v495_v56, %v1099_v35 }
 0x54c   :  { %v188_v46 = vpop.xlane.xlu1 %187 }
 0x54d   :  { %v198_v21 = vadd.f32 %v188_v46, %v989_v18 }
 0x54f   :  { %796 = vtanh.f32 %v198_v21 }
 0x550   :  { %v191_v31 = vpop.xlane.xlu1 %190  ;;  %798 = vtanh.f32 %v349_v30 }
 0x551   :  { %v199_v33 = vadd.f32 %v191_v31, %v989_v18 }
 0x553   :  { %800 = vtanh.f32 %v199_v33 }
 0x554   :  { %v342_v34 = vpop.xlane.xlu1 %341 }
 0x555   :  { %v350_v40 = vadd.f32 %v342_v34, %v1053_v25 }
 0x557   :  { %802 = vtanh.f32 %v350_v40 }
 0x558   :  { %v194_v14 = vpop.xlane.xlu1 %193 }
 0x559   :  { %v797_v1 = vpop.eup %796  ;;  %v200_v13 = vadd.f32 %v194_v14, %v989_v18 }
 0x55a   :  { %v206_v41 = vmul.f32 %v797_v1, %v797_v1  ;;  %v799_v20 = vpop.eup %798 }
 0x55b   :  { %804 = vtanh.f32 %v200_v13  ;;  %v357_v47 = vmul.f32 %v799_v20, %v799_v20 }
 0x55c   :  { %v210_v43 = vsub.f32 1.0, %v206_v41  ;;  %v345_v15 = vpop.xlane.xlu1 %344 }
 0x55d   :  { %v801_v45 = vpop.eup %800  ;;  %v351_v3 = vadd.f32 %v345_v15, %v1053_v25  ;;  %v361_v22 = vsub.f32 1.0, %v357_v47 }
 0x55e   :  { %v207_v49 = vmul.f32 %v801_v45, %v801_v45  ;;  %v214_v50 = vmul.f32 %v210_v43, %v963_v2 }
 0x55f   :  { %806 = vtanh.f32 %v351_v3  ;;  %v365_v62 = vmul.f32 %v361_v22, %v963_v2 }
 0x560   :  { %v211_v51 = vsub.f32 1.0, %v207_v49  ;;  %222 = vrot.lane.b32.xlu0 %v214_v50, %s910_s17  ;;  %v489_v54 = vpop.xlane.xlu1 %488 }
 0x561   :  { %v803_v55 = vpop.eup %802  ;;  %v499_v8 = vadd.f32 %v489_v54, %v1099_v35 }
 0x562   :  { %v358_v57 = vmul.f32 %v803_v55, %v803_v55  ;;  %v215_v12 = vmul.f32 %v211_v51, %v996_v29 }
 0x563   :  { %808 = vtanh.f32 %v499_v8 }
 0x564   :  { %224 = vrot.lane.b32.xlu1 %v215_v12, %s910_s17  ;;  %v492_v28 = vpop.xlane.xlu1 %491  ;;  %v362_v60 = vsub.f32 1.0, %v358_v57 }
 0x565   :  { %v805_v58 = vpop.eup %804  ;;  %v500_v19 = vadd.f32 %v492_v28, %v1099_v35 }
 0x566   :  { %v208_v61 = vmul.f32 %v805_v58, %v805_v58  ;;  %v366_v9 = vmul.f32 %v362_v60, %v996_v29 }
 0x567   :  { %810 = vtanh.f32 %v500_v19 }
 0x568   :  { %v212_v44 = vsub.f32 1.0, %v208_v61  ;;  %373 = vrot.lane.b32.xlu1 %v365_v62, %s911_s18  ;;  %v197_v63 = vpop.xlane.xlu1 %196  ;;  %812 = vtanh.f32 %v501_v59 }
 0x569   :  { %v807_v0 = vpop.eup %806  ;;  %v201_v4 = vadd.f32 %v197_v63, %v989_v18 }
 0x56a   :  { %v359_v48 = vmul.f32 %v807_v0, %v807_v0  ;;  %v216_v42 = vmul.f32 %v212_v44, %v998_v32 }
 0x56b   :  { %814 = vtanh.f32 %v201_v4 }
 0x56c   :  { %v363_v10 = vsub.f32 1.0, %v359_v48  ;;  %375 = vrot.lane.b32.xlu1 %v366_v9, %s911_s18  ;;  %226 = vrot.lane.b32.xlu0 %v216_v42, %s910_s17  ;;  %v348_v11 = vpop.xlane.xlu1 %347 }
 0x56d   :  { %v809_v16 = vpop.eup %808  ;;  %v352_v17 = vadd.f32 %v348_v11, %v1053_v25 }
 0x56e   :  { %v507_v53 = vmul.f32 %v809_v16, %v809_v16  ;;  %v367_v6 = vmul.f32 %v363_v10, %v998_v32 }
 0x56f   :  { %816 = vtanh.f32 %v352_v17 }
 0x570   :  { %v511_v18 = vsub.f32 1.0, %v507_v53  ;;  %377 = vrot.lane.b32.xlu1 %v367_v6, %s911_s18  ;;  %v498_v23 = vpop.xlane.xlu1 %497 }
 0x571   :  { %v811_v24 = vpop.eup %810  ;;  %v502_v26 = vadd.f32 %v498_v23, %v1099_v35 }
 0x572   :  { %v508_v27 = vmul.f32 %v811_v24, %v811_v24  ;;  %v515_v37 = vmul.f32 %v511_v18, %v963_v2  ;;  %v813_v38 = vpop.eup %812 }
 0x573   :  { %818 = vtanh.f32 %v502_v26  ;;  %v509_v46 = vmul.f32 %v813_v38, %v813_v38 }
 0x574   :  { %v512_v39 = vsub.f32 1.0, %v508_v27  ;;  %523 = vrot.lane.b32.xlu0 %v515_v37, %s912_s19 }
 0x575   :  { %v815_v25 = vpop.eup %814  ;;  %v513_v34 = vsub.f32 1.0, %v509_v46 }
 0x576   :  { %v209_v30 = vmul.f32 %v815_v25, %v815_v25  ;;  %v516_v21 = vmul.f32 %v512_v39, %v996_v29 }
 0x577   :  { %v517_v41 = vmul.f32 %v513_v34, %v998_v32 }
 0x578   :  { %v213_v31 = vsub.f32 1.0, %v209_v30  ;;  %525 = vrot.lane.b32.xlu1 %v516_v21, %s912_s19 }
 0x579   :  { %v817_v33 = vpop.eup %816 }
 0x57a   :  { %v360_v40 = vmul.f32 %v817_v33, %v817_v33  ;;  %v217_v35 = vmul.f32 %v213_v31, %v1002_v36 }
 0x57c   :  { %v364_v14 = vsub.f32 1.0, %v360_v40  ;;  %228 = vrot.lane.b32.xlu0 %v217_v35, %s910_s17 }
 0x57d   :  { %v819_v1 = vpop.eup %818 }
 0x57e   :  { %v510_v13 = vmul.f32 %v819_v1, %v819_v1  ;;  %v368_v20 = vmul.f32 %v364_v14, %v1002_v36 }
 0x580   :  { %v514_v43 = vsub.f32 1.0, %v510_v13  ;;  %527 = vrot.lane.b32.xlu0 %v517_v41, %s912_s19  ;;  %379 = vrot.lane.b32.xlu1 %v368_v20, %s911_s18  ;;  %v83_v13 = vmul.f32 %v968_v5, %v968_v5  ;;  %v85_v41 = vmul.f32 %v972_v7, %v972_v7 }
 0x582   :  { %v518_v15 = vmul.f32 %v514_v43, %v1002_v36  ;;  %v90_v20 = vsel %vm86_vm0, %v83_v13, 0.0  ;;  %v96_v43 = vsel %vm86_vm0, %v85_v41, 0.0 }
 0x584   :  { %529 = vrot.lane.b32.xlu1 %v518_v15, %s912_s19 }
 0x5be   :  { %v642_v45 = vpop.xlane.xlu0 %641  ;;  %v639_v3 = vpop.xlane.xlu1 %638 }
 0x5bf   :  { %v650_v47 = vadd.f32 %v642_v45, %v1145_v52  ;;  %v649_v49 = vadd.f32 %v639_v3, %v1145_v52 }
 0x5c1   :  { %820 = vtanh.f32 %v650_v47 }
 0x5c2   :  { %822 = vtanh.f32 %v649_v49  ;;  %v645_v50 = vpop.xlane.xlu0 %644  ;;  %v648_v51 = vpop.xlane.xlu1 %647 }
 0x5c3   :  { %v651_v54 = vadd.f32 %v645_v50, %v1145_v52  ;;  %v652_v55 = vadd.f32 %v648_v51, %v1145_v52 }
 0x5c5   :  { %824 = vtanh.f32 %v651_v54 }
 0x5c6   :  { %826 = vtanh.f32 %v652_v55  ;;  %v836_v55 = vld [vmem:[#allocation2] sm:$0xff] }
 0x5cb   :  { %v821_v8 = vpop.eup %820 }
 0x5cc   :  { %v823_v22 = vpop.eup %822  ;;  %v658_v56 = vmul.f32 %v821_v8, %v821_v8  ;;  %v82_v8 = vmul.f32 %v836_v55, %v836_v55 }
 0x5cd   :  { %v657_v57 = vmul.f32 %v823_v22, %v823_v22 }
 0x5ce   :  { %v662_v12 = vsub.f32 1.0, %v658_v56  ;;  %v87_v56 = vsel %vm86_vm0, %v82_v8, 0.0 }
 0x5cf   :  { %v825_v28 = vpop.eup %824  ;;  %v661_v58 = vsub.f32 1.0, %v657_v57  ;;  %v837_v57 = vld [vmem:[#allocation2 + $0x10] sm:$0xff] }
 0x5d0   :  { %v827_v59 = vpop.eup %826  ;;  %v659_v19 = vmul.f32 %v825_v28, %v825_v28  ;;  %v666_v60 = vmul.f32 %v662_v12, %v996_v29  ;;  %v84_v12 = vmul.f32 %v837_v57, %v837_v57 }
 0x5d1   :  { %v660_v61 = vmul.f32 %v827_v59, %v827_v59  ;;  %v665_v62 = vmul.f32 %v661_v58, %v963_v2 }
 0x5d2   :  { %v663_v44 = vsub.f32 1.0, %v659_v19  ;;  %675 = vrot.lane.b32.xlu0 %v666_v60, %s913_s20  ;;  %v223_v9 = vpop.permute.xlu0 %222  ;;  %v93_v28 = vsel %vm86_vm0, %v84_v12, 0.0 }
 0x5d3   :  { %v664_v52 = vsub.f32 1.0, %v660_v61  ;;  %673 = vrot.lane.b32.xlu1 %v665_v62, %s913_s20  ;;  %v235_v16 = vsel %vm234_vm5, %v223_v9, 0.0 }
 0x5d4   :  { %v667_v63 = vmul.f32 %v663_v44, %v998_v32 }
 0x5d5   :  { %v668_v0 = vmul.f32 %v664_v52, %v1002_v36 }
 0x5d6   :  { %677 = vrot.lane.b32.xlu0 %v667_v63, %s913_s20  ;;  %v225_v4 = vpop.permute.xlu1 %224 }
 0x5d7   :  { %679 = vrot.lane.b32.xlu1 %v668_v0, %s913_s20  ;;  %v236_v2 = vsel %vm234_vm5, %v225_v4, 0.0 }
 0x5d8   :  { %v237_v6 = vadd.f32 %v236_v2, %v235_v16 }
 0x5da   :  { %v374_v48 = vpop.permute.xlu1 %373 }
 0x5db   :  { %v385_v25 = vsel %vm234_vm5, %v374_v48, 0.0 }
 0x5de   :  { %v376_v42 = vpop.permute.xlu1 %375  ;;  %v227_v10 = vpop.permute.xlu0 %226 }
 0x5df   :  { %v238_v17 = vsel %vm234_vm5, %v227_v10, 0.0  ;;  %v386_v24 = vsel %vm234_vm5, %v376_v42, 0.0 }
 0x5e0   :  { %v239_v18 = vadd.f32 %v238_v17, %v237_v6  ;;  %v387_v21 = vadd.f32 %v386_v24, %v385_v25 }
 0x5e2   :  { %v378_v29 = vpop.permute.xlu1 %377 }
 0x5e3   :  { %v388_v46 = vsel %vm234_vm5, %v378_v29, 0.0 }
 0x5e4   :  { %v389_v40 = vadd.f32 %v388_v46, %v387_v21 }
 0x5e6   :  { %v524_v11 = vpop.permute.xlu0 %523 }
 0x5e7   :  { %v535_v37 = vsel %vm234_vm5, %v524_v11, 0.0 }
 0x5ea   :  { %v526_v53 = vpop.permute.xlu1 %525 }
 0x5eb   :  { %v536_v23 = vsel %vm234_vm5, %v526_v53, 0.0 }
 0x5ec   :  { %v537_v30 = vadd.f32 %v536_v23, %v535_v37 }
 0x5ee   :  { %v229_v32 = vpop.permute.xlu0 %228 }
 0x5ef   :  { %v240_v36 = vsel %vm234_vm5, %v229_v32, 0.0 }
 0x5f0   :  { %v241_v39 = vadd.f32 %v240_v36, %v239_v18 }
 0x5f2   :  { %v528_v26 = vpop.permute.xlu0 %527  ;;  %v380_v27 = vpop.permute.xlu1 %379 }
 0x5f3   :  { %v538_v38 = vsel %vm234_vm5, %v528_v26, 0.0  ;;  %v390_v33 = vsel %vm234_vm5, %v380_v27, 0.0 }
 0x5f4   :  { %v539_v31 = vadd.f32 %v538_v38, %v537_v30  ;;  %v391_v1 = vadd.f32 %v390_v33, %v389_v40 }
 0x5f5   :  { %242 = vadd.xlane.f32.xlu0 %v241_v39 }
 0x5f6   :  { %v530_v34 = vpop.permute.xlu1 %529 }
 0x5f7   :  { %v540_v35 = vsel %vm234_vm5, %v530_v34, 0.0 }
 0x5f8   :  { %v541_v14 = vadd.f32 %v540_v35, %v539_v31 }
 0x5fa   :  { %542 = vadd.xlane.f32.xlu0 %v541_v14 }
 0x5fb   :  { %392 = vadd.xlane.f32.xlu1 %v391_v1 }
 0x5ff   :  { %91 = vadd.xlane.f32.xlu1 %v90_v20 }
 0x603   :  { %97 = vadd.xlane.f32.xlu1 %v96_v43 }
 0x644   :  { %v676_v15 = vpop.permute.xlu0 %675 }
 0x645   :  { %v686_v45 = vsel %vm234_vm5, %v676_v15, 0.0  ;;  %v674_v3 = vpop.permute.xlu1 %673 }
 0x646   :  { %v685_v47 = vsel %vm234_vm5, %v674_v3, 0.0 }
 0x647   :  { %v687_v49 = vadd.f32 %v686_v45, %v685_v47 }
 0x648   :  { %v678_v50 = vpop.permute.xlu0 %677 }
 0x649   :  { %v688_v51 = vsel %vm234_vm5, %v678_v50, 0.0  ;;  %v680_v5 = vpop.permute.xlu1 %679 }
 0x64a   :  { %v689_v54 = vadd.f32 %v688_v51, %v687_v49  ;;  %v690_v7 = vsel %vm234_vm5, %v680_v5, 0.0 }
 0x64c   :  { %v691_v22 = vadd.f32 %v690_v7, %v689_v54 }
 0x64e   :  { %692 = vadd.xlane.f32.xlu0 %v691_v22 }
 0x652   :  { %88 = vadd.xlane.f32.xlu0 %v87_v56 }
 0x656   :  { %94 = vadd.xlane.f32.xlu0 %v93_v28 }
 0x682   :  { %v243_v58 = vpop.xlane.xlu0 %242 }
 0x683   :  { %v244_v59 = vrot.slane %v243_v58, 4 }
 0x685   :  { %v245_v19 = vadd.f32 %v244_v59, %v243_v58 }
 0x687   :  { %v246_v60 = vrot.slane %v245_v19, 2  ;;  %v543_v61 = vpop.xlane.xlu0 %542 }
 0x688   :  { %v544_v62 = vrot.slane %v543_v61, 4  ;;  %v393_v44 = vpop.xlane.xlu1 %392 }
 0x689   :  { %v394_v52 = vrot.slane %v393_v44, 4  ;;  %v247_v63 = vadd.f32 %v246_v60, %v245_v19 }
 0x68a   :  { %v545_v0 = vadd.f32 %v544_v62, %v543_v61 }
 0x68b   :  { %v395_v4 = vadd.f32 %v394_v52, %v393_v44  ;;  %v248_v48 = vrot.slane %v247_v63, 1 }
 0x68c   :  { %v546_v9 = vrot.slane %v545_v0, 2  ;;  %v92_v41 = vpop.xlane.xlu1 %91 }
 0x68d   :  { %v396_v42 = vrot.slane %v395_v4, 2  ;;  %v249_v10 = vadd.f32 %v248_v48, %v247_v63  ;;  %v100_v55 = vmul.f32 -0.5, %v92_v41 }
 0x68e   :  { %v547_v29 = vadd.f32 %v546_v9, %v545_v0 }
 0x68f   :  { %734 = vpush %v249_v10  ;;  %v397_v11 = vadd.f32 %v396_v42, %v395_v4  ;;  %v728_v59 = vadd.f32 -29.406033, %v100_v55 }
 0x690   :  { %v548_v2 = vrot.slane %v547_v29, 1  ;;  %v98_v3 = vpop.xlane.xlu1 %97 }
 0x691   :  { %v398_v16 = vrot.slane %v397_v11, 1  ;;  %v102_v5 = vmul.f32 -0.5, %v98_v3 }
 0x692   :  { %v549_v17 = vadd.f32 %v548_v2, %v547_v29 }
 0x693   :  { %v399_v53 = vadd.f32 %v398_v16, %v397_v11  ;;  %v730_v12 = vadd.f32 -29.406033, %v102_v5 }
 0x695   :  { %736 = vpush %v399_v53 }
 0x696   :  { %738 = vpush %v549_v17 }
 0x6c0   :  { %s735_s21 = spop %734 }
 0x6c1   :  { %v251_v37 = vstv %s735_s21 }
 0x6c2   :  { %v252_v39 = vadd.f32 1.0, %v251_v37 }
 0x6c4   :  { %v253_v30 = vand.u32 2147483647, %v252_v39 }
 0x6c6   :  { %s737_s22 = spop %736  ;;  %v254_v33 = vadd.f32 1e-08, %v253_v30 }
 0x6c7   :  { %v401_v27 = vstv %s737_s22  ;;  %s739_s23 = spop %738 }
 0x6c8   :  { %v402_v38 = vadd.f32 1.0, %v401_v27  ;;  %v551_v25 = vstv %s739_s23 }
 0x6c9   :  { %v552_v21 = vadd.f32 1.0, %v551_v25 }
 0x6ca   :  { %v403_v46 = vand.u32 2147483647, %v402_v38 }
 0x6cb   :  { %v553_v34 = vand.u32 2147483647, %v552_v21 }
 0x6cc   :  { %v404_v31 = vadd.f32 1e-08, %v403_v46 }
 0x6cd   :  { %v554_v40 = vadd.f32 1e-08, %v553_v34 }
 0x6ce   :  { %828 = vlog2.f32 %v404_v31 }
 0x6cf   :  { %830 = vlog2.f32 %v254_v33 }
 0x6d0   :  { %832 = vlog2.f32 %v554_v40 }
 0x6d8   :  { %v829_v43 = vpop.eup %828 }
 0x6d9   :  { %v831_v15 = vpop.eup %830  ;;  %v406_v45 = vmul.f32 0.6931472, %v829_v43 }
 0x6da   :  { %v256_v49 = vmul.f32 0.6931472, %v831_v15  ;;  %v833_v50 = vpop.eup %832 }
 0x6db   :  { %v693_v32 = vpop.xlane.xlu0 %692  ;;  %v556_v7 = vmul.f32 0.6931472, %v833_v50 }
 0x6dc   :  { %v694_v6 = vrot.slane %v693_v32, 4  ;;  %v407_v51 = vadd.f32 %v406_v45, %v256_v49 }
 0x6de   :  { %v695_v36 = vadd.f32 %v694_v6, %v693_v32  ;;  %v557_v56 = vadd.f32 %v556_v7, %v407_v51 }
 0x6df   :  { %v89_v20 = vpop.xlane.xlu0 %88 }
 0x6e0   :  { %v696_v18 = vrot.slane %v695_v36, 2  ;;  %v99_v8 = vmul.f32 -0.5, %v89_v20 }
 0x6e2   :  { %v697_v23 = vadd.f32 %v696_v18, %v695_v36  ;;  %v727_v19 = vadd.f32 -29.406033, %v99_v8 }
 0x6e3   :  { %v95_v47 = vpop.xlane.xlu0 %94 }
 0x6e4   :  { %v698_v24 = vrot.slane %v697_v23, 1  ;;  %v101_v54 = vmul.f32 -0.5, %v95_v47 }
 0x6e6   :  { %v699_v26 = vadd.f32 %v698_v24, %v697_v23  ;;  %v729_v28 = vadd.f32 -29.406033, %v101_v54 }
 0x6e8   :  { %740 = vpush %v699_v26 }
 0x719   :  { %s741_s24 = spop %740 }
 0x71a   :  { %v701_v35 = vstv %s741_s24 }
 0x71b   :  { %v702_v14 = vadd.f32 1.0, %v701_v35 }
 0x71d   :  { %v703_v1 = vand.u32 2147483647, %v702_v14 }
 0x71f   :  { %v704_v13 = vadd.f32 1e-08, %v703_v1 }
 0x721   :  { %834 = vlog2.f32 %v704_v13 }
 0x72b   :  { %v835_v22 = vpop.eup %834 }
 0x72c   :  { %v706_v57 = vmul.f32 0.6931472, %v835_v22 }
 0x72e   :  { %v707_v58 = vadd.f32 %v706_v57, %v557_v56 }
 0x730   :  { %v709_v60 = vsub.f32 %v728_v59, %v707_v58  ;;  %v708_v61 = vsub.f32 %v727_v19, %v707_v58  ;;  %v711_v62 = vsub.f32 %v730_v12, %v707_v58  ;;  %v710_v44 = vsub.f32 %v729_v28, %v707_v58 }
 0x732   :  { %713 = vst.msk [vmem:[%s1294_s3 + $0x8] sm:$0xff] %vm234_vm5, %v709_v60  ;;  %712 = vst.msk [vmem:[%s1294_s3] sm:$0xff] %vm234_vm5, %v708_v61 }
 0x733   :  { %715 = vst.msk [vmem:[%s1294_s3 + $0x18] sm:$0xff] %vm234_vm5, %v711_v62  ;;  %714 = vst.msk [vmem:[%s1294_s3 + $0x10] sm:$0xff] %vm234_vm5, %v710_v44 }
 0x734   :  { %720 = vsyncpa [#allocation3], 1 }
 0x735   :  { %721 = vsyncpa [#allocation6], 1 }
 0x736   :  { %722 = vsyncpa [#allocation4], 1 }

</bundles_post_ra>
